<compile_context>
chip_gen: v5e
topology: v5e:2x2
jax: 0.10.0
libtpu: 0.0.40
codegen_flags: <defaults>
</compile_context>

<pallas_src>
import jax
import jax.numpy as jnp
from jax.experimental import pallas as pl
from jax.experimental.pallas import tpu as pltpu


# ----------------------------------------------------------------------------
# activation helpers (mirror nn.ReLU / nn.ELU / nn.LeakyReLU / nn.Tanh defaults)
# ----------------------------------------------------------------------------
def _apply_activation(name, x):
    if name == "relu":
        return jnp.maximum(x, 0.0)
    if name == "tanh":
        return jnp.tanh(x)
    if name == "elu":
        # expm1 for precision near 0; clamp arg so the untaken branch is benign
        return jnp.where(x > 0, x, jnp.expm1(jnp.minimum(x, 0.0)))
    if name == "leaky_relu":
        return jnp.where(x > 0, x, 0.01 * x)
    raise ValueError(f"unknown activation {name}")


# ----------------------------------------------------------------------------
# operand packing: stack 2-D matrices along rows (segment starts aligned),
# zero-pad columns to a common width.  Returns (packed, [(row_off, rows, cols)])
# ----------------------------------------------------------------------------
def _pack_rows(mats, dtype, align):
    maxw = max(m.shape[1] for m in mats)
    pieces, segs, off = [], [], 0
    for m in mats:
        r, c = m.shape
        segs.append((off, r, c))
        pieces.append(jnp.pad(m, ((0, 0), (0, maxw - c))))
        r_al = -(-r // align) * align
        if r_al != r:
            pieces.append(jnp.zeros((r_al - r, maxw), m.dtype))
        off += r_al
    packed = jnp.concatenate(pieces, axis=0).astype(dtype)
    return packed, segs


# ----------------------------------------------------------------------------
# Pallas kernel factory
# ----------------------------------------------------------------------------
def _make_kernel(activation, w_segs, b_segs):
    """w_segs: [(off, rows, cols)] for [input_layer, hidden..., output_branch]
       b_segs: [(off, rows, 1)]    for [input_layer, hidden...]"""
    n_dense = len(b_segs)  # input layer + hidden layers

    def kernel(vals_ref, nan_ref, w_ref, b_ref, r_ref, s_ref, out_ref):
        # MLP stream, batch-on-lane: x is [features, TILE_B]
        x = nan_ref[...].astype(jnp.bfloat16)
        for li in range(n_dense):
            woff, wr, wc = w_segs[li]
            boff, br, _ = b_segs[li]
            w = w_ref[woff:woff + wr, 0:wc]                 # [H_out, H_in] bf16
            b = b_ref[boff:boff + br, :]                    # [H_out, 1]    f32
            h = jnp.dot(w, x, preferred_element_type=jnp.float32) + b
            h = _apply_activation(activation, h)
            # TODO(synk): dropout after the input-layer activation is identity
            # (eval mode); training-mode stochastic dropout not implemented.
            x = h.astype(jnp.bfloat16)

        # output branch (no bias): cw_t = W_out @ x  -> [I*O, TILE_B] f32
        woff, wr, wc = w_segs[-1]
        w_out = w_ref[woff:woff + wr, 0:wc]
        cw_t = jnp.dot(w_out, x, preferred_element_type=jnp.float32)

        # compensation contraction via static selector matmuls (f32, exact)
        vals_t = vals_ref[...]                              # [I, TILE_B] f32
        vals_rep = jnp.dot(r_ref[...], vals_t,
                           preferred_element_type=jnp.float32)   # [I*O, TILE_B]
        prod = vals_rep * cw_t
        out_ref[...] = jnp.dot(s_ref[...], prod,
                               preferred_element_type=jnp.float32
                               ).astype(out_ref.dtype)

    return kernel


# ----------------------------------------------------------------------------
# Python wrapper
# ----------------------------------------------------------------------------
def compensate_dense_forward(input_values, nan_flag, params, *,
                             input_dimension, output_dimension,
                             activation="relu", tile_b=128):
    """params use PyTorch nn.Linear layout:
         'w_in':  [H0, nan_flag_dim],  'b_in':  [H0]
         'w_h':   list of [H_{l+1}, H_l], 'b_h': list of [H_{l+1}]
         'w_out': [input_dim * output_dim, H_last]   (no bias)
    """
    B = input_values.shape[0]
    F = nan_flag.shape[1]
    I, O = input_dimension, output_dimension
    assert I % 8 == 0 and F % 8 == 0 and O % 8 == 0, \
        "feature dims must be multiples of 8 for the (8,128) tiling rule"

    # ---- pack parameters: one bf16 weight operand, one f32 bias operand ----
    w_list = [params["w_in"]] + list(params["w_h"]) + [params["w_out"]]
    b_list = [params["b_in"]] + list(params["b_h"])
    w_pack, w_segs = _pack_rows(w_list, jnp.bfloat16, align=16)
    b_pack, b_segs = _pack_rows([b.reshape(-1, 1) for b in b_list],
                                jnp.float32, align=8)

    # ---- static 0/1 selector matrices for the compensation contraction ----
    j = jnp.arange(I * O)
    r_t = (j[:, None] // O == jnp.arange(I)[None, :]).astype(jnp.float32)   # [I*O, I]
    s_t = (jnp.arange(O)[:, None] == (j[None, :] % O)).astype(jnp.float32)  # [O, I*O]

    # ---- batch-on-lane layout (layout plumbing done in the wrapper) ----
    vals_t = input_values.astype(jnp.float32).T       # [I, B]
    nan_t = nan_flag.astype(jnp.float32).T            # [F, B]
    n_tiles = pl.cdiv(B, tile_b)
    bp = n_tiles * tile_b
    if bp != B:
        vals_t = jnp.pad(vals_t, ((0, 0), (0, bp - B)))
        nan_t = jnp.pad(nan_t, ((0, 0), (0, bp - B)))

    kernel = _make_kernel(activation, w_segs, b_segs)

    out_t = pl.pallas_call(
        kernel,
        out_shape=jax.ShapeDtypeStruct((O, bp), jnp.float32),
        grid=(n_tiles,),
        in_specs=[
            pl.BlockSpec((I, tile_b), lambda b: (0, b)),      # input_values^T
            pl.BlockSpec((F, tile_b), lambda b: (0, b)),      # nan_flag^T
            pl.BlockSpec(w_pack.shape, lambda b: (0, 0)),     # packed weights (resident)
            pl.BlockSpec(b_pack.shape, lambda b: (0, 0)),     # packed biases  (resident)
            pl.BlockSpec(r_t.shape, lambda b: (0, 0)),        # selector R^T   (resident)
            pl.BlockSpec(s_t.shape, lambda b: (0, 0)),        # selector S^T   (resident)
        ],
        out_specs=pl.BlockSpec((O, tile_b), lambda b: (0, b)),
        compiler_params=pltpu.CompilerParams(
            dimension_semantics=("parallel",)),               # megacore on v7x
    )(vals_t, nan_t, w_pack, b_pack, r_t, s_t)

    return out_t[:, :B].T.astype(input_values.dtype)


# ----------------------------------------------------------------------------
# pure-JAX reference (mirrors the kernel's bf16-matmul / f32-accumulate math)
# ----------------------------------------------------------------------------
def reference_forward(input_values, nan_flag, params, *, input_dimension,
                      output_dimension, activation="relu"):
    def dense(x, w, b):
        y = jnp.dot(x.astype(jnp.bfloat16), w.astype(jnp.bfloat16).T,
                    preferred_element_type=jnp.float32)
        return y if b is None else y + b[None, :]

    x = _apply_activation(activation, dense(nan_flag, params["w_in"], params["b_in"]))
    for w, b in zip(params["w_h"], params["b_h"]):
        x = _apply_activation(activation, dense(x, w, b))
    cw = dense(x, params["w_out"], None)
    B = input_values.shape[0]
    cw3 = cw.reshape(B, input_dimension, output_dimension)
    return jnp.einsum("bi,bio->bo", input_values.astype(jnp.float32), cw3)


# ----------------------------------------------------------------------------
# main
# ----------------------------------------------------------------------------
if __name__ == "__main__":
    # module configuration (consistent with the PyTorch __init__)
    input_dimension = 16
    nan_flag_dimension = 16              # default: == input_dimension
    hidden_layers_dimensions = [32, 32]  # -> 1 hidden layer after input_layer
    output_dimension = 16                # default: == input_dimension
    activation = "relu"
    B = 256
    TILE_B = 128

    key = jax.random.PRNGKey(0)
    keys = jax.random.split(key, 16)

    def init_w(k, fan_out, fan_in):      # PyTorch layout [out, in]
        return (jax.random.normal(k, (fan_out, fan_in), jnp.float32)
                * (1.0 / jnp.sqrt(fan_in)))

    params = {
        "w_in": init_w(keys[0], hidden_layers_dimensions[0], nan_flag_dimension),
        "b_in": jax.random.normal(keys[1], (hidden_layers_dimensions[0],),
                                  jnp.float32) * 0.1,
        "w_h": [],
        "b_h": [],
        "w_out": init_w(keys[2], input_dimension * output_dimension,
                        hidden_layers_dimensions[-1]),
    }
    kidx = 3
    for layer in range(len(hidden_layers_dimensions) - 1):
        fan_in = hidden_layers_dimensions[layer]
        fan_out = hidden_layers_dimensions[layer + 1]
        params["w_h"].append(init_w(keys[kidx], fan_out, fan_in))
        params["b_h"].append(
            jax.random.normal(keys[kidx + 1], (fan_out,), jnp.float32) * 0.1)
        kidx += 2

    # inputs: values with zero-imputed missing entries, nan_flag in {0,1}
    input_values = jax.random.normal(keys[kidx], (B, input_dimension), jnp.float32)
    nan_flag = (jax.random.uniform(keys[kidx + 1], (B, nan_flag_dimension))
                < 0.3).astype(jnp.float32)
    input_values = input_values * (1.0 - nan_flag[:, :input_dimension])

    out = compensate_dense_forward(
        input_values, nan_flag, params,
        input_dimension=input_dimension,
        output_dimension=output_dimension,
        activation=activation,
        tile_b=TILE_B,
    )
    out = jax.block_until_ready(out)

    ref = reference_forward(
        input_values, nan_flag, params,
        input_dimension=input_dimension,
        output_dimension=output_dimension,
        activation=activation,
    )
    assert out.shape == (B, output_dimension)
    err = jnp.max(jnp.abs(out - ref))
    assert jnp.allclose(out, ref, atol=2e-3, rtol=2e-3), f"max abs err = {err}"

    print("KERNEL_OK")
</pallas_src>

<mosaic_0001>
module attributes {stable_mosaic.version = 11 : i64} {
  func.func @kernel(%arg0: i32, %arg1: memref<16x128xf32, #tpu.memory_space<vmem>>, %arg2: memref<16x128xf32, #tpu.memory_space<vmem>>, %arg3: memref<320x32xbf16, #tpu.memory_space<vmem>>, %arg4: memref<64x1xf32, #tpu.memory_space<vmem>>, %arg5: memref<256x16xf32, #tpu.memory_space<vmem>>, %arg6: memref<16x256xf32, #tpu.memory_space<vmem>>, %arg7: memref<16x128xf32, #tpu.memory_space<vmem>>) attributes {dimension_semantics = [#tpu.dimension_semantics<parallel>], iteration_bounds = array<i64: 2>, scalar_prefetch = 0 : i64, scratch_operands = 0 : i64, tpu.core_type = #tpu.core_type<tc>, window_params = [{transform_indices = @transform_0, window_bounds = array<i64: 16, 128>}, {transform_indices = @transform_1, window_bounds = array<i64: 16, 128>}, {pipeline_mode = #tpu.pipeline_mode<synchronous>, transform_indices = @transform_2, window_bounds = array<i64: 320, 32>}, {pipeline_mode = #tpu.pipeline_mode<synchronous>, transform_indices = @transform_3, window_bounds = array<i64: 64, 1>}, {pipeline_mode = #tpu.pipeline_mode<synchronous>, transform_indices = @transform_4, window_bounds = array<i64: 256, 16>}, {pipeline_mode = #tpu.pipeline_mode<synchronous>, transform_indices = @transform_5, window_bounds = array<i64: 16, 256>}, {transform_indices = @transform_6, window_bounds = array<i64: 16, 128>}]} {
    %c0 = arith.constant 0 : index
    %c0_0 = arith.constant 0 : index
    %0 = vector.load %arg2[%c0, %c0_0] : memref<16x128xf32, #tpu.memory_space<vmem>>, vector<16x128xf32>
    %1 = arith.truncf %0 : vector<16x128xf32> to vector<16x128xbf16>
    %c0_1 = arith.constant 0 : index
    %c0_2 = arith.constant 0 : index
    %2 = vector.load %arg3[%c0_1, %c0_2] : memref<320x32xbf16, #tpu.memory_space<vmem>>, vector<32x16xbf16>
    %c0_3 = arith.constant 0 : index
    %c0_4 = arith.constant 0 : index
    %3 = vector.load %arg4[%c0_3, %c0_4] : memref<64x1xf32, #tpu.memory_space<vmem>>, vector<32x1xf32>
    %cst = arith.constant dense<0.000000e+00> : vector<32x128xf32>
    %4 = tpu.matmul %2, %1, %cst {dimension_numbers = #tpu.dot_dimension_numbers<[1], [0], [0], [1], [0, 0, 1, 1], [], []>} : vector<32x16xbf16>, vector<16x128xbf16>, vector<32x128xf32> -> vector<32x128xf32>
    %5 = vector.broadcast %3 : vector<32x1xf32> to vector<32x128xf32>
    %6 = arith.addf %4, %5 : vector<32x128xf32>
    %cst_5 = arith.constant 0.000000e+00 : f32
    %7 = vector.broadcast %cst_5 : f32 to vector<32x128xf32>
    %8 = arith.maximumf %6, %7 : vector<32x128xf32>
    %9 = arith.truncf %8 : vector<32x128xf32> to vector<32x128xbf16>
    %c32 = arith.constant 32 : index
    %c0_6 = arith.constant 0 : index
    %10 = vector.load %arg3[%c32, %c0_6] : memref<320x32xbf16, #tpu.memory_space<vmem>>, vector<32x32xbf16>
    %c32_7 = arith.constant 32 : index
    %c0_8 = arith.constant 0 : index
    %11 = vector.load %arg4[%c32_7, %c0_8] : memref<64x1xf32, #tpu.memory_space<vmem>>, vector<32x1xf32>
    %cst_9 = arith.constant dense<0.000000e+00> : vector<32x128xf32>
    %12 = tpu.matmul %10, %9, %cst_9 {dimension_numbers = #tpu.dot_dimension_numbers<[1], [0], [0], [1], [0, 0, 1, 1], [], []>} : vector<32x32xbf16>, vector<32x128xbf16>, vector<32x128xf32> -> vector<32x128xf32>
    %13 = vector.broadcast %11 : vector<32x1xf32> to vector<32x128xf32>
    %14 = arith.addf %12, %13 : vector<32x128xf32>
    %cst_10 = arith.constant 0.000000e+00 : f32
    %15 = vector.broadcast %cst_10 : f32 to vector<32x128xf32>
    %16 = arith.maximumf %14, %15 : vector<32x128xf32>
    %17 = arith.truncf %16 : vector<32x128xf32> to vector<32x128xbf16>
    %c64 = arith.constant 64 : index
    %c0_11 = arith.constant 0 : index
    %18 = vector.load %arg3[%c64, %c0_11] : memref<320x32xbf16, #tpu.memory_space<vmem>>, vector<256x32xbf16>
    %cst_12 = arith.constant dense<0.000000e+00> : vector<256x128xf32>
    %19 = tpu.matmul %18, %17, %cst_12 {dimension_numbers = #tpu.dot_dimension_numbers<[1], [0], [0], [1], [0, 0, 1, 1], [], []>} : vector<256x32xbf16>, vector<32x128xbf16>, vector<256x128xf32> -> vector<256x128xf32>
    %c0_13 = arith.constant 0 : index
    %c0_14 = arith.constant 0 : index
    %20 = vector.load %arg1[%c0_13, %c0_14] : memref<16x128xf32, #tpu.memory_space<vmem>>, vector<16x128xf32>
    %c0_15 = arith.constant 0 : index
    %c0_16 = arith.constant 0 : index
    %21 = vector.load %arg5[%c0_15, %c0_16] : memref<256x16xf32, #tpu.memory_space<vmem>>, vector<256x16xf32>
    %cst_17 = arith.constant dense<0.000000e+00> : vector<256x128xf32>
    %22 = tpu.matmul %21, %20, %cst_17 {dimension_numbers = #tpu.dot_dimension_numbers<[1], [0], [0], [1], [0, 0, 1, 1], [], []>} : vector<256x16xf32>, vector<16x128xf32>, vector<256x128xf32> -> vector<256x128xf32>
    %23 = arith.mulf %22, %19 : vector<256x128xf32>
    %c0_18 = arith.constant 0 : index
    %c0_19 = arith.constant 0 : index
    %24 = vector.load %arg6[%c0_18, %c0_19] : memref<16x256xf32, #tpu.memory_space<vmem>>, vector<16x256xf32>
    %cst_20 = arith.constant dense<0.000000e+00> : vector<16x128xf32>
    %25 = tpu.matmul %24, %23, %cst_20 {dimension_numbers = #tpu.dot_dimension_numbers<[1], [0], [0], [1], [0, 0, 1, 1], [], []>} : vector<16x256xf32>, vector<256x128xf32>, vector<16x128xf32> -> vector<16x128xf32>
    %c0_21 = arith.constant 0 : index
    %c0_22 = arith.constant 0 : index
    %26 = vector.load %arg7[%c0_21, %c0_22] : memref<16x128xf32, #tpu.memory_space<vmem>>, vector<16x128xf32>
    tpu.vector_store %arg7[%c0_21, %c0_22], %25 {strides = array<i32>} : memref<16x128xf32, #tpu.memory_space<vmem>>, vector<16x128xf32>,
    return
  }
  func.func @transform_0(%arg0: i32) -> (i32, i32) {
    %c0_i32 = arith.constant 0 : i32
    %c0_i32_0 = arith.constant 0 : i32
    return %c0_i32, %arg0 : i32, i32
  }
  func.func @transform_1(%arg0: i32) -> (i32, i32) {
    %c0_i32 = arith.constant 0 : i32
    %c0_i32_0 = arith.constant 0 : i32
    return %c0_i32, %arg0 : i32, i32
  }
  func.func @transform_2(%arg0: i32) -> (i32, i32) {
    %c0_i32 = arith.constant 0 : i32
    %c0_i32_0 = arith.constant 0 : i32
    %c0_i32_1 = arith.constant 0 : i32
    return %c0_i32, %c0_i32_0 : i32, i32
  }
  func.func @transform_3(%arg0: i32) -> (i32, i32) {
    %c0_i32 = arith.constant 0 : i32
    %c0_i32_0 = arith.constant 0 : i32
    %c0_i32_1 = arith.constant 0 : i32
    return %c0_i32, %c0_i32_0 : i32, i32
  }
  func.func @transform_4(%arg0: i32) -> (i32, i32) {
    %c0_i32 = arith.constant 0 : i32
    %c0_i32_0 = arith.constant 0 : i32
    %c0_i32_1 = arith.constant 0 : i32
    return %c0_i32, %c0_i32_0 : i32, i32
  }
  func.func @transform_5(%arg0: i32) -> (i32, i32) {
    %c0_i32 = arith.constant 0 : i32
    %c0_i32_0 = arith.constant 0 : i32
    %c0_i32_1 = arith.constant 0 : i32
    return %c0_i32, %c0_i32_0 : i32, i32
  }
  func.func @transform_6(%arg0: i32) -> (i32, i32) {
    %c0_i32 = arith.constant 0 : i32
    %c0_i32_0 = arith.constant 0 : i32
    return %c0_i32, %arg0 : i32, i32
  }
}

</mosaic_0001>

<bundles_post_ra>
// kernel: tpu_custom_call.1
= control target key start
LH: loop header
LB: loop body
LE: loop exit
PB: predicated region body
PF: predicated region fallthrough
CT: control target
= control target key end

     0   :  { %11 = vsyncpa [#allocation5], 0  ;;  %s1875_s0 = inlined_call_operand.vmem [shape: f32[16,256], index: 0, kind: input, shape index: {}]   ;;  %s1876_s1 = inlined_call_operand.vmem [shape: f32[16,256], index: 1, kind: input, shape index: {}]   ;;  %s1877_s2 = inlined_call_operand.vmem [shape: bf16[320,32], index: 2, kind: input, shape index: {}]   ;;  %s1878_s3 = inlined_call_operand.vmem [shape: f32[64,1], index: 3, kind: input, shape index: {}]   ;;  %s1879_s4 = inlined_call_operand.vmem [shape: f32[256,16], index: 4, kind: input, shape index: {}]   ;;  %s1880_s5 = inlined_call_operand.vmem [shape: f32[16,256], index: 5, kind: input, shape index: {}]   ;;  %s1881_s6 = inlined_call_operand.hbm [shape: f32[16,256], index: 6, kind: output, shape index: {}]  }
   0x1   :  { %13 = vsyncpa [#allocation5 + $0x1], 0  ;;  %s1489_s21 = smov 0   ;;  %s1491_s22 = smov 0  }
   0x2   :  { %s1493_s23 = smov 0   ;;  %s1495_s24 = smov 0  }
   0x3 LB: > { %s1168_s25 = sadd.s32 4294967295, %s1448_s24   ;;  %s1169_s26 = sadd.s32 4294967294, %s1448_s24   ;;  %s1448_s24 = sphi %s1495_s24, %s1888_s24   ;;  %s1444_s23 = sphi %s1493_s23, %s1887_s23   ;;  %s1440_s22 = sphi %s1491_s22, %s1886_s22   ;;  %s1436_s21 = sphi %s1489_s21, %s1885_s21  }
   0x4   : > { %s1512_s27 = sadd.s32 1, %s1448_s24   ;;  %s26_s28 = sadd.s32 1, %s1444_s23 }
   0x5   : > { %s23_s29 = ssub.s32 %s1448_s24, %s1512_s27  ;;  %p33_p0 = scmp.ne.s32.totalorder %s1444_s23, %s1440_s22 }
   0x6   : > { %p24_p1 = scmp.eq.s32.totalorder %s23_s29, 0  ;;  %p34_p2 = scmp.eq.s32.totalorder %s1448_s24, 0 }
   0x7   : > { %p173_p3 = scmp.eq.s32.totalorder %s1168_s25, 1  ;;  %p178_p4 = scmp.ne.s32.totalorder %s1440_s22, %s1436_s21 }
   0x8   : > { %s1525_s30 = scalar_select %p24_p1, %s1444_s23, %s26_s28  }
   0x9   : > { %p1527_p5 = por %p34_p2, %p33_p0  ;;  %p1531_p6 = por %p173_p3, %p33_p0 }
   0xa   : > { %p179_p7 = scmp.eq.s32.totalorder %s1169_s26, 1  ;;  %p1171_p9 = scmp.ge.s32.totalorder %s1448_s24, 2 }
   0xc   : > { %p1535_p8 = por %p179_p7, %p178_p4  ;;  %207 = sbr.rel (%p1171_p9) target bundleno = 29 (0x1d), region = 32 }
  0x11   : > { %210 = sbr.rel (!%p1527_p5) target bundleno = 23 (0x17), region = 36  ;;  %s212_s10 = sand.u32 (%p1527_p5), 1, %s1444_s23  }
  0x12   : > { %s1173_s11 = sshll.u32 (%p1527_p5), %s1448_s24, 3  ;;  %s1172_s12 = sshll.u32 (%p1527_p5), %s212_s10, 4 }
  0x13   : > { %s216_s15 = scalar_lea.vmem (%p1527_p5), %s1875_s0, %s1173_s11  ;;  %s214_s16 = scalar_lea.vmem (%p1527_p5), [#allocation2], %s1172_s12 }
  0x14   : > { %v247_v0 = vld [vmem:[%s216_s15] sm:$0xff] (%p1527_p5)  ;;  %v249_v1 = vld [vmem:[%s216_s15 + $0x10] sm:$0xff] (%p1527_p5) }
  0x15   : > { %248 = vst [vmem:[%s214_s16] sm:$0xff] (%p1527_p5), %v247_v0 }
  0x16   : > { %250 = vst [vmem:[%s214_s16 + $0x8] sm:$0xff] %v249_v1 }
  0x17 PF: > { %256 = sbr.rel (!%p1527_p5) target bundleno = 29 (0x1d), region = 74  ;;  %s258_s17 = sand.u32 (%p1527_p5), 1, %s1444_s23  }
  0x18   : > { %s1175_s18 = sshll.u32 (%p1527_p5), %s1448_s24, 3  ;;  %s1174_s19 = sshll.u32 (%p1527_p5), %s258_s17, 4 }
  0x19   : > { %s262_s28 = scalar_lea.vmem (%p1527_p5), %s1876_s1, %s1175_s18  ;;  %s260_s29 = scalar_lea.vmem (%p1527_p5), [#allocation3], %s1174_s19 }
  0x1a   : > { %v293_v2 = vld [vmem:[%s262_s28] sm:$0xff] (%p1527_p5)  ;;  %v295_v3 = vld [vmem:[%s262_s28 + $0x10] sm:$0xff] (%p1527_p5) }
  0x1b   : > { %294 = vst [vmem:[%s260_s29] sm:$0xff] (%p1527_p5), %v293_v2 }
  0x1c   : > { %296 = vst [vmem:[%s260_s29 + $0x8] sm:$0xff] %v295_v3 }
  0x1d PF: > { %p1176_p10 = scmp.ge.s32.totalorder %s1448_s24, 1  ;;  %p301_p11 = scmp.lt.s32.totalorder %s1448_s24, 3 }
  0x1f   : > { %p302_p12 = pnand %p1176_p10, %p301_p11 }
  0x20   : > { %s308_s7 = sand.u32 (!%p302_p12), 1, %s1440_s22   ;;  %s1313_s10 = sshll.u32 (!%p302_p12), %s1168_s25, 3 }
  0x21   : > { %305 = sbr.rel (%p302_p12) target bundleno = 829 (0x33d), region = 112  ;;  %s1567_s14 = sshll.u32 (!%p302_p12), %s308_s7, 4 }
  0x22   : > { %s317_s15 = scalar_lea.vmem (!%p302_p12), [#allocation3], %s1567_s14  ;;  %s310_s29 = scalar_lea.vmem (!%p302_p12), [#allocation2], %s1567_s14 }
  0x23   : > { %s1079_s13 = scalar_lea.hbm (!%p302_p12), %s1881_s6, %s1313_s10  ;;  %s1069_s18 = scalar_lea.sflag (!%p302_p12), [#allocation5], %s308_s7 }
  0x24   : > { %s1082_s17 = sshll.u32 (!%p302_p12), %s1079_s13, 4  ;;  %s1406_s26 = scalar_lea.hbm (!%p302_p12), %s1881_s6, 32  ;;  %s1083_s17 = int_to_ptr.hbm [resolvable:$true] %s1082_s17 }
  0x25   : > { %s1400_s25 = sshra.s32 (!%p302_p12), %s1083_s17, 4  ;;  %s1401_s25 = int_to_ptr.hbm [resolvable:$true] %s1400_s25 }
  0x26   : > { %v358_v4 = vld [vmem:[%s1878_s3 + $0x10] sm:$0xff]  ;;  %v356_v5 = vld [vmem:[%s1878_s3] sm:$0xff]  ;;  %v1450_v6 = vmov 0   ;;  %v350_v8 = vld [vmem:[%s317_s15 + $0x8] sm:$0xff]  ;;  %vm390_vm0 = vcmask 130048   ;;  %vm460_vm1 = vcmask 261120   ;;  %p1407_p2 = scmp.lt.s32.totalorder %s1401_s25, %s1881_s6 }
  0x27   : > { %1384 = vset.pattern.permute.xlu1 %v1450_v6  ;;  %1383 = vset.pattern.permute.xlu0 %v1450_v6  ;;  %v349_v7 = vld [vmem:[%s317_s15] sm:$0xff]  ;;  %v359_v11 = vld [vmem:[%s1878_s3 + $0x18] sm:$0xff]  ;;  %v357_v12 = vld [vmem:[%s1878_s3 + $0x8] sm:$0xff]  ;;  %s347_s15 = scalar_lea.vmem [#allocation4], %s1567_s14  ;;  %s1402_s19 = scalar_lea.hbm %s1401_s25, 16 }
  0x28   : > { %372 = vperm.xlu0 %1383, %v358_v4   ;;  %362 = vperm.xlu1 %1384, %v356_v5   ;;  %v351_v9 = vpack.c.bf16 %v350_v8, %v349_v7  ;;  %v1316_v10 = vld [vmem:[%s1877_s2] sm:$0xff]  ;;  %v427_v14 = vld [vmem:[%s1878_s3 + $0x28] sm:$0xff]  ;;  %v428_v22 = vld [vmem:[%s1878_s3 + $0x30] sm:$0xff]  ;;  %s1080_s16 = sshll.u32 %s347_s15, 4  ;;  %p1403_p13 = scmp.ne.s32.totalorder %s1401_s25, %s1402_s19  ;;  %s1081_s16 = int_to_ptr.vmem [resolvable:$true] %s1080_s16 }
  0x29   : > { %1385 = vset.pattern.permute.xlu2 %v1450_v6  ;;  %v426_v13 = vld [vmem:[%s1878_s3 + $0x20] sm:$0xff]  ;;  %v1317_v15 = vld [vmem:[%s1877_s2 + $0x8] sm:$0xff]  ;;  %v429_v31 = vld [vmem:[%s1878_s3 + $0x38] sm:$0xff]  ;;  %p1408_p3 = scmp.lt.s32.totalorder %s1406_s26, %s1402_s19 }
  0x2a   : > { %404 = vmatpush.bf16.msra.mxu0 %v351_v9  ;;  %442 = vperm.xlu2 %1385, %v428_v22   ;;  %v1318_v36 = vld [vmem:[%s1877_s2 + $0x10] sm:$0xff]  ;;  %v1319_v37 = vld [vmem:[%s1877_s2 + $0x18] sm:$0xff]  ;;  %v743_v41 = vld [vmem:[%s1879_s4] sm:$0xff]  ;;  %p1404_p0 = pnand %p1403_p13, %p1531_p6 }
  0x2b   : > { %v742_v39 = vld [vmem:[%s310_s29 + $0x8] sm:$0xff]  ;;  %v741_v40 = vld [vmem:[%s310_s29] sm:$0xff]  ;;  %p1409_p4 = por %p1408_p3, %p1407_p2 }
  0x2c   : > { %1338 = vmatpush.msra.mxu3 %v742_v39  ;;  %v755_v42 = vld [vmem:[%s1879_s4 + $0x60] sm:$0xff]  ;;  %v744_v44 = vld [vmem:[%s1879_s4 + $0x8] sm:$0xff]  ;;  %v745_v48 = vld [vmem:[%s1879_s4 + $0x10] sm:$0xff]  ;;  %p1405_p1 = pneg %p1404_p0 }
  0x2d   : > { %1188 = vmatmul.msk.bf16.vlgmr.msra.gmra.mxu0 %vm390_vm0, %v1316_v10  ;;  %v756_v45 = vld [vmem:[%s1879_s4 + $0x68] sm:$0xff]  ;;  %v757_v49 = vld [vmem:[%s1879_s4 + $0x70] sm:$0xff]  ;;  %v746_v60 = vld [vmem:[%s1879_s4 + $0x18] sm:$0xff] }
  0x2e   : > { %1339 = vmatpush.msra.mxu3 %v741_v40  ;;  %v758_v61 = vld [vmem:[%s1879_s4 + $0x78] sm:$0xff]  ;;  %v1320_v2 = vld [vmem:[%s1877_s2 + $0x20] sm:$0xff]  ;;  %v1326_v3 = vld [vmem:[%s1877_s2 + $0x50] sm:$0xff]  ;;  %p1410_p5 = pnand %p1409_p4, %p1405_p1 }
  0x2f   : > { %1292 = vmatmul.msk.f32.vlgmr.msra.gmra.mxu3 %vm390_vm0, %v755_v42  ;;  %v747_v4 = vld [vmem:[%s1879_s4 + $0x20] sm:$0xff]  ;;  %v748_v6 = vld [vmem:[%s1879_s4 + $0x28] sm:$0xff]  ;;  %v1327_v9 = vld [vmem:[%s1877_s2 + $0x58] sm:$0xff] }
  0x30   : > { %377 = vperm.xlu0 %1383, %v359_v11   ;;  %367 = vperm.xlu1 %1384, %v357_v12   ;;  %v759_v5 = vld [vmem:[%s1879_s4 + $0x80] sm:$0xff]  ;;  %v760_v7 = vld [vmem:[%s1879_s4 + $0x88] sm:$0xff]  ;;  %v749_v10 = vld [vmem:[%s1879_s4 + $0x30] sm:$0xff] }
  0x31   : > { %v1321_v8 = vld [vmem:[%s1877_s2 + $0x28] sm:$0xff]  ;;  %v761_v11 = vld [vmem:[%s1879_s4 + $0x90] sm:$0xff]  ;;  %v750_v12 = vld [vmem:[%s1879_s4 + $0x38] sm:$0xff] }
  0x32   : > { %447 = vperm.xlu2 %1385, %v429_v31   ;;  %v753_v22 = vld [vmem:[%s1879_s4 + $0x50] sm:$0xff]  ;;  %v1331_v31 = vld [vmem:[%s1877_s2 + $0x78] sm:$0xff] }
  0x33   : > { %v773_v42 = vld [vmem:[%s1879_s4 + $0xf0] sm:$0xff] }
  0x37   : > { %1293 = vmatmul.msk.f32.gmra.mxu3 %vm390_vm0, %v756_v45 }
  0x38   : > { %432 = vperm.xlu0 %1383, %v426_v13   ;;  %437 = vperm.xlu1 %1384, %v427_v14   ;;  %v762_v13 = vld [vmem:[%s1879_s4 + $0x98] sm:$0xff]  ;;  %v1322_v14 = vld [vmem:[%s1877_s2 + $0x30] sm:$0xff] }
  0x3d   : > { %1189 = vmatmul.msk.bf16.gmra.mxu0 %vm390_vm0, %v1317_v15  ;;  %v1328_v15 = vld [vmem:[%s1877_s2 + $0x60] sm:$0xff] }
  0x3f   : > { %1294 = vmatmul.msk.f32.gmra.mxu3 %vm390_vm0, %v757_v49 }
  0x47   : > { %1295 = vmatmul.msk.f32.gmra.mxu3 %vm390_vm0, %v758_v61 }
  0x4f   : > { %1296 = vmatmul.msk.f32.gmra.mxu3 %vm390_vm0, %v759_v5 }
  0x57   : > { %1297 = vmatmul.msk.f32.gmra.mxu3 %vm390_vm0, %v760_v7 }
  0x5f   : > { %1298 = vmatmul.msk.f32.gmra.mxu3 %vm390_vm0, %v761_v11 }
  0x67   : > { %1299 = vmatmul.msk.f32.gmra.mxu3 %vm390_vm0, %v762_v13 }
  0x84   : > { %v443_v46 = vpop.permute.xlu2 %442 }
  0x8c   : > { %v448_v52 = vpop.permute.xlu2 %447 }
  0x9a   : > { %v363_v18 = vpop.permute.xlu1 %362  ;;  %v373_v19 = vpop.permute.xlu0 %372 }
  0xa2   : > { %v368_v21 = vpop.permute.xlu1 %367  ;;  %v378_v24 = vpop.permute.xlu0 %377 }
  0xaa   : > { %v406_v16 = vpop.f32.mrf.mxu0  ;;  %v438_v50 = vpop.permute.xlu1 %437 }
  0xab   : > { %v407_v28 = vadd.f32 %v406_v16, %v363_v18  ;;  %v433_v56 = vpop.permute.xlu0 %432  ;;  %v751_v16 = vld [vmem:[%s1879_s4 + $0x40] sm:$0xff]  ;;  %v752_v18 = vld [vmem:[%s1879_s4 + $0x48] sm:$0xff] }
  0xad   : > { %v416_v34 = vmax.f32 %v407_v28, 0.0  ;;  %v767_v28 = vld [vmem:[%s1879_s4 + $0xc0] sm:$0xff] }
  0xb2   : > { %v408_v17 = vpop.f32.mrf.mxu0 }
  0xb3   : > { %v409_v26 = vadd.f32 %v408_v17, %v368_v21  ;;  %v763_v17 = vld [vmem:[%s1879_s4 + $0xa0] sm:$0xff]  ;;  %v1329_v21 = vld [vmem:[%s1877_s2 + $0x68] sm:$0xff] }
  0xb4   : > { %1300 = vmatmul.msk.f32.gmra.mxu3 %vm390_vm0, %v763_v17 }
  0xb5   : > { %v417_v32 = vmax.f32 %v409_v26, 0.0  ;;  %v1324_v26 = vld [vmem:[%s1877_s2 + $0x40] sm:$0xff] }
  0xb7   : > { %v420_v35 = vpack.c.bf16 %v417_v32, %v416_v34  ;;  %v769_v32 = vld [vmem:[%s1879_s4 + $0xd0] sm:$0xff]  ;;  %v1332_v34 = vld [vmem:[%s1877_s2 + $0x80] sm:$0xff] }
  0xba   : > { %v411_v20 = vpop.f32.mrf.mxu0 }
  0xbb   : > { %v412_v23 = vadd.f32 %v411_v20, %v373_v19  ;;  %v764_v19 = vld [vmem:[%s1879_s4 + $0xa8] sm:$0xff]  ;;  %v1323_v20 = vld [vmem:[%s1877_s2 + $0x38] sm:$0xff] }
  0xbc   : > { %1301 = vmatmul.msk.f32.gmra.mxu3 %vm390_vm0, %v764_v19 }
  0xbd   : > { %v418_v29 = vmax.f32 %v412_v23, 0.0  ;;  %v765_v23 = vld [vmem:[%s1879_s4 + $0xb0] sm:$0xff] }
  0xc2   : > { %v413_v25 = vpop.f32.mrf.mxu0 }
  0xc3   : > { %v414_v27 = vadd.f32 %v413_v25, %v378_v24  ;;  %v754_v24 = vld [vmem:[%s1879_s4 + $0x58] sm:$0xff] }
  0xc4   : > { %1302 = vmatmul.msk.f32.gmra.mxu3 %vm390_vm0, %v765_v23  ;;  %v766_v25 = vld [vmem:[%s1879_s4 + $0xb8] sm:$0xff] }
  0xc5   : > { %v419_v30 = vmax.f32 %v414_v27, 0.0  ;;  %v1330_v27 = vld [vmem:[%s1877_s2 + $0x70] sm:$0xff] }
  0xc7   : > { %v421_v33 = vpack.c.bf16 %v419_v30, %v418_v29  ;;  %v768_v29 = vld [vmem:[%s1879_s4 + $0xc8] sm:$0xff] }
  0xc8   : > { %v1325_v30 = vld [vmem:[%s1877_s2 + $0x48] sm:$0xff] }
  0xc9   : > { %473 = vmatpush.bf16.msra.mxu1 %v421_v33  ;;  %v770_v33 = vld [vmem:[%s1879_s4 + $0xd8] sm:$0xff] }
  0xcc   : > { %1303 = vmatmul.msk.f32.gmra.mxu3 %vm390_vm0, %v766_v25 }
  0xcd   : > { %474 = vmatpush.bf16.msra.mxu1 %v420_v35  ;;  %v771_v35 = vld [vmem:[%s1879_s4 + $0xe0] sm:$0xff] }
  0xd0   : > { %1198 = vmatmul.msk.bf16.vlgmr.msra.gmra.mxu1 %vm460_vm1, %v1318_v36  ;;  %v924_v36 = vpop.f32.mrf.mxu3 }
  0xd1   : > { %885 = vmatpush.msrb.mxu1 %v742_v39 }
  0xd3   : > { %886 = vmatpush.msrb.mxu1 %v741_v40  ;;  %v1333_v40 = vld [vmem:[%s1877_s2 + $0x88] sm:$0xff] }
  0xd4   : > { %1304 = vmatmul.msk.f32.gmra.mxu3 %vm390_vm0, %v767_v28 }
  0xd8   : > { %v927_v39 = vpop.f32.mrf.mxu3 }
  0xdc   : > { %1305 = vmatmul.msk.f32.gmra.mxu3 %vm390_vm0, %v768_v29 }
  0xe0   : > { %1199 = vmatmul.msk.bf16.gmra.mxu1 %vm460_vm1, %v1319_v37 }
  0xe4   : > { %1306 = vmatmul.msk.f32.gmra.mxu3 %vm390_vm0, %v769_v32 }
  0xec   : > { %1307 = vmatmul.msk.f32.gmra.mxu3 %vm390_vm0, %v770_v33 }
  0xf0   : > { %1280 = vmatmul.msk.f32.vlgmr.msrb.gmra.mxu1 %vm390_vm0, %v743_v41 }
  0xf4   : > { %1308 = vmatmul.msk.f32.gmra.mxu3 %vm390_vm0, %v771_v35 }
  0xf8   : > { %1281 = vmatmul.msk.f32.gmra.mxu1 %vm390_vm0, %v744_v44  ;;  %v774_v44 = vld [vmem:[%s1879_s4 + $0xf8] sm:$0xff] }
 0x100   : > { %1282 = vmatmul.msk.f32.gmra.mxu1 %vm390_vm0, %v745_v48 }
 0x108   : > { %1283 = vmatmul.msk.f32.gmra.mxu1 %vm390_vm0, %v746_v60 }
 0x110   : > { %1284 = vmatmul.msk.f32.gmra.mxu1 %vm390_vm0, %v747_v4 }
 0x118   : > { %1285 = vmatmul.msk.f32.gmra.mxu1 %vm390_vm0, %v748_v6 }
 0x120   : > { %1286 = vmatmul.msk.f32.gmra.mxu1 %vm390_vm0, %v749_v10 }
 0x128   : > { %1287 = vmatmul.msk.f32.gmra.mxu1 %vm390_vm0, %v750_v12 }
 0x130   : > { %1288 = vmatmul.msk.f32.gmra.mxu1 %vm390_vm0, %v751_v16 }
 0x138   : > { %1289 = vmatmul.msk.f32.gmra.mxu1 %vm390_vm0, %v752_v18 }
 0x140   : > { %1290 = vmatmul.msk.f32.gmra.mxu1 %vm390_vm0, %v753_v22 }
 0x148   : > { %1291 = vmatmul.msk.f32.gmra.mxu1 %vm390_vm0, %v754_v24 }
 0x14d   : > { %v476_v38 = vpop.f32.mrf.mxu1 }
 0x14e   : > { %v477_v57 = vadd.f32 %v476_v38, %v433_v56  ;;  %v772_v38 = vld [vmem:[%s1879_s4 + $0xe8] sm:$0xff]  ;;  %v1335_v56 = vld [vmem:[%s1877_s2 + $0x98] sm:$0xff] }
 0x14f   : > { %1309 = vmatmul.msk.f32.gmra.mxu3 %vm390_vm0, %v772_v38 }
 0x150   : > { %v486_v0 = vmax.f32 %v477_v57, 0.0 }
 0x155   : > { %v478_v43 = vpop.f32.mrf.mxu1 }
 0x156   : > { %v479_v54 = vadd.f32 %v478_v43, %v438_v50  ;;  %v930_v43 = vpop.f32.mrf.mxu3 }
 0x157   : > { %1310 = vmatmul.msk.f32.gmra.mxu3 %vm390_vm0, %v773_v42 }
 0x158   : > { %v487_v62 = vmax.f32 %v479_v54, 0.0 }
 0x15a   : > { %v490_v1 = vpack.c.bf16 %v487_v62, %v486_v0 }
 0x15d   : > { %v481_v47 = vpop.f32.mrf.mxu1 }
 0x15e   : > { %v482_v51 = vadd.f32 %v481_v47, %v443_v46  ;;  %v933_v46 = vpop.f32.mrf.mxu3  ;;  %v1334_v47 = vld [vmem:[%s1877_s2 + $0x90] sm:$0xff] }
 0x15f   : > { %1311 = vmatmul.msk.f32.gmra.mxu3 %vm390_vm0, %v774_v44 }
 0x160   : > { %v488_v58 = vmax.f32 %v482_v51, 0.0 }
 0x165   : > { %v483_v53 = vpop.f32.mrf.mxu1 }
 0x166   : > { %v484_v55 = vadd.f32 %v483_v53, %v448_v52  ;;  %v936_v52 = vpop.f32.mrf.mxu3 }
 0x168   : > { %v489_v59 = vmax.f32 %v484_v55, 0.0 }
 0x16a   : > { %v491_v63 = vpack.c.bf16 %v489_v59, %v488_v58 }
 0x16c   : > { %658 = vmatpush.bf16.msrb.mxu0 %v491_v63  ;;  %1336 = vmatpush.bf16.msra.mxu2 %v491_v63 }
 0x16d   : > { %v888_v37 = vpop.f32.mrf.mxu1 }
 0x16e   : > { %v939_v59 = vpop.f32.mrf.mxu3 }
 0x170   : > { %659 = vmatpush.bf16.msrb.mxu0 %v490_v1  ;;  %1337 = vmatpush.bf16.msra.mxu2 %v490_v1 }
 0x173   : > { %1264 = vmatmul.msk.bf16.vlgmr.msrb.gmra.mxu0 %vm460_vm1, %v1320_v2  ;;  %1270 = vmatmul.msk.bf16.vlgmr.msra.gmra.mxu2 %vm460_vm1, %v1326_v3 }
 0x175   : > { %v891_v41 = vpop.f32.mrf.mxu1 }
 0x176   : > { %v942_v1 = vpop.f32.mrf.mxu3 }
 0x17d   : > { %v894_v45 = vpop.f32.mrf.mxu1 }
 0x183   : > { %1265 = vmatmul.msk.bf16.gmra.mxu0 %vm460_vm1, %v1321_v8  ;;  %1271 = vmatmul.msk.bf16.gmra.mxu2 %vm460_vm1, %v1327_v9  ;;  %v945_v9 = vpop.f32.mrf.mxu3 }
 0x185   : > { %v897_v50 = vpop.f32.mrf.mxu1 }
 0x18b   : > { %v948_v16 = vpop.f32.mrf.mxu3 }
 0x18d   : > { %v900_v57 = vpop.f32.mrf.mxu1 }
 0x193   : > { %1266 = vmatmul.msk.bf16.gmra.mxu0 %vm460_vm1, %v1322_v14  ;;  %1272 = vmatmul.msk.bf16.gmra.mxu2 %vm460_vm1, %v1328_v15  ;;  %v951_v23 = vpop.f32.mrf.mxu3 }
 0x195   : > { %v903_v0 = vpop.f32.mrf.mxu1 }
 0x19b   : > { %v954_v28 = vpop.f32.mrf.mxu3 }
 0x19d   : > { %v906_v8 = vpop.f32.mrf.mxu1 }
 0x1a3   : > { %1267 = vmatmul.msk.bf16.gmra.mxu0 %vm460_vm1, %v1323_v20  ;;  %1273 = vmatmul.msk.bf16.gmra.mxu2 %vm460_vm1, %v1329_v21  ;;  %v957_v33 = vpop.f32.mrf.mxu3 }
 0x1a5   : > { %v909_v14 = vpop.f32.mrf.mxu1 }
 0x1ad   : > { %v912_v21 = vpop.f32.mrf.mxu1 }
 0x1b3   : > { %1268 = vmatmul.msk.bf16.gmra.mxu0 %vm460_vm1, %v1324_v26  ;;  %1274 = vmatmul.msk.bf16.gmra.mxu2 %vm460_vm1, %v1330_v27 }
 0x1b5   : > { %v915_v27 = vpop.f32.mrf.mxu1 }
 0x1bd   : > { %v918_v32 = vpop.f32.mrf.mxu1 }
 0x1c3   : > { %1269 = vmatmul.msk.bf16.gmra.mxu0 %vm460_vm1, %v1325_v30  ;;  %1275 = vmatmul.msk.bf16.gmra.mxu2 %vm460_vm1, %v1331_v31 }
 0x1d3   : > { %1276 = vmatmul.msk.bf16.gmra.mxu2 %vm460_vm1, %v1332_v34 }
 0x1e3   : > { %1277 = vmatmul.msk.bf16.gmra.mxu2 %vm460_vm1, %v1333_v40 }
 0x1f0   : > { %v661_v48 = vpop.f32.mrf.mxu0 }
 0x1f1   : > { %v1792_v49 = vmul.f32 %v888_v37, %v661_v48  ;;  %v921_v37 = vpop.f32.mrf.mxu1 }
 0x1f3   : > { %1278 = vmatmul.msk.bf16.gmra.mxu2 %vm460_vm1, %v1334_v47 }
 0x1f6   : > { %v691_v51 = vpop.f32.mrf.mxu2 }
 0x1f7   : > { %v996_v10 = vmul.f32 %v924_v36, %v691_v51 }
 0x1f8   : > { %v663_v53 = vpop.f32.mrf.mxu0 }
 0x1f9   : > { %v1795_v54 = vmul.f32 %v891_v41, %v663_v53 }
 0x1fe   : > { %v693_v55 = vpop.f32.mrf.mxu2 }
 0x1ff   : > { %v997_v7 = vmul.f32 %v927_v39, %v693_v55  ;;  %v960_v39 = vpop.f32.mrf.mxu3 }
 0x200   : > { %v666_v58 = vpop.f32.mrf.mxu0 }
 0x201   : > { %v1800_v60 = vmul.f32 %v894_v45, %v666_v58 }
 0x203   : > { %1279 = vmatmul.msk.bf16.gmra.mxu2 %vm460_vm1, %v1335_v56 }
 0x206   : > { %v696_v61 = vpop.f32.mrf.mxu2 }
 0x207   : > { %v998_v5 = vmul.f32 %v930_v43, %v696_v61 }
 0x208   : > { %v668_v62 = vpop.f32.mrf.mxu0 }
 0x209   : > { %v1803_v63 = vmul.f32 %v897_v50, %v668_v62  ;;  %v963_v50 = vpop.f32.mrf.mxu3 }
 0x20e   : > { %v698_v2 = vpop.f32.mrf.mxu2 }
 0x20f   : > { %v999_v3 = vmul.f32 %v933_v46, %v698_v2 }
 0x210   : > { %v671_v4 = vpop.f32.mrf.mxu0 }
 0x211   : > { %v988_v6 = vmul.f32 %v900_v57, %v671_v4  ;;  %1020 = vmatpush.msra.mxu0 %v999_v3  ;;  %v966_v56 = vpop.f32.mrf.mxu3 }
 0x213   : > { %1021 = vmatpush.msra.mxu0 %v998_v5 }
 0x215   : > { %1022 = vmatpush.msra.mxu0 %v997_v7 }
 0x216   : > { %v701_v11 = vpop.f32.mrf.mxu2 }
 0x217   : > { %v1805_v12 = vmul.f32 %v936_v52, %v701_v11  ;;  %1023 = vmatpush.msra.mxu0 %v996_v10 }
 0x218   : > { %v673_v13 = vpop.f32.mrf.mxu0 }
 0x219   : > { %v989_v52 = vmul.f32 %v903_v0, %v673_v13  ;;  %v969_v58 = vpop.f32.mrf.mxu3  ;;  %v1017_v13 = vld [vmem:[%s1880_s5 + $0x8] sm:$0xff] }
 0x21e   : > { %v703_v15 = vpop.f32.mrf.mxu2 }
 0x21f   : > { %v1807_v17 = vmul.f32 %v939_v59, %v703_v15 }
 0x220   : > { %v676_v18 = vpop.f32.mrf.mxu0 }
 0x221   : > { %v990_v51 = vmul.f32 %v906_v8, %v676_v18  ;;  %v972_v62 = vpop.f32.mrf.mxu3  ;;  %v1018_v8 = vld [vmem:[%s1880_s5 + $0x10] sm:$0xff] }
 0x226   : > { %v706_v19 = vpop.f32.mrf.mxu2 }
 0x227   : > { %v1809_v20 = vmul.f32 %v942_v1, %v706_v19 }
 0x228   : > { %v678_v22 = vpop.f32.mrf.mxu0 }
 0x229   : > { %v991_v47 = vmul.f32 %v909_v14, %v678_v22  ;;  %v975_v1 = vpop.f32.mrf.mxu3  ;;  %v1019_v14 = vld [vmem:[%s1880_s5 + $0x18] sm:$0xff] }
 0x22e   : > { %v708_v24 = vpop.f32.mrf.mxu2 }
 0x22f   : > { %v1811_v25 = vmul.f32 %v945_v9, %v708_v24 }
 0x230   : > { %v681_v26 = vpop.f32.mrf.mxu0 }
 0x231   : > { %v992_v45 = vmul.f32 %v912_v21, %v681_v26  ;;  %v978_v3 = vpop.f32.mrf.mxu3 }
 0x236   : > { %v711_v29 = vpop.f32.mrf.mxu2 }
 0x237   : > { %v1813_v30 = vmul.f32 %v948_v16, %v711_v29 }
 0x238   : > { %v683_v31 = vpop.f32.mrf.mxu0 }
 0x239   : > { %v993_v44 = vmul.f32 %v915_v27, %v683_v31  ;;  %v981_v5 = vpop.f32.mrf.mxu3 }
 0x23e   : > { %v713_v34 = vpop.f32.mrf.mxu2 }
 0x23f   : > { %v1815_v35 = vmul.f32 %v951_v23, %v713_v34 }
 0x240   : > { %v686_v36 = vpop.f32.mrf.mxu0 }
 0x241   : > { %v994_v42 = vmul.f32 %v918_v32, %v686_v36 }
 0x246   : > { %v716_v38 = vpop.f32.mrf.mxu2 }
 0x247   : > { %v1006_v40 = vmul.f32 %v954_v28, %v716_v38 }
 0x248   : > { %v688_v41 = vpop.f32.mrf.mxu0 }
 0x249   : > { %v995_v43 = vmul.f32 %v921_v37, %v688_v41 }
 0x24b   : > { %1024 = vmatpush.msra.mxu0 %v995_v43 }
 0x24d   : > { %1025 = vmatpush.msra.mxu0 %v994_v42 }
 0x24e   : > { %v718_v46 = vpop.f32.mrf.mxu2 }
 0x24f   : > { %v1007_v48 = vmul.f32 %v957_v33, %v718_v46  ;;  %1026 = vmatpush.msra.mxu0 %v993_v44 }
 0x251   : > { %1027 = vmatpush.msra.mxu0 %v992_v45 }
 0x253   : > { %1028 = vmatpush.msra.mxu0 %v991_v47 }
 0x255   : > { %1029 = vmatpush.msra.mxu0 %v990_v51 }
 0x256   : > { %v721_v53 = vpop.f32.mrf.mxu2 }
 0x257   : > { %v1008_v55 = vmul.f32 %v960_v39, %v721_v53  ;;  %1030 = vmatpush.msra.mxu0 %v989_v52 }
 0x259   : > { %1031 = vmatpush.msra.mxu0 %v988_v6 }
 0x25b   : > { %1032 = vmatpush.msra.mxu0 %v1803_v63 }
 0x25d   : > { %1033 = vmatpush.msra.mxu0 %v1800_v60  ;;  %v1016_v60 = vld [vmem:[%s1880_s5] sm:$0xff] }
 0x25e   : > { %v723_v57 = vpop.f32.mrf.mxu2 }
 0x25f   : > { %1034 = vmatpush.msra.mxu0 %v1795_v54  ;;  %v1009_v11 = vmul.f32 %v963_v50, %v723_v57 }
 0x261   : > { %1035 = vmatpush.msra.mxu0 %v1792_v49 }
 0x262   : > { %1036 = vmatmul.f32.vlgmr.msra.gmra.mxu0 %v1016_v60 }
 0x266   : > { %v726_v59 = vpop.f32.mrf.mxu2 }
 0x267   : > { %v1010_v10 = vmul.f32 %v966_v56, %v726_v59 }
 0x26a   : > { %1039 = vmatmul.f32.gmra.mxu0 %v1018_v8 }
 0x26e   : > { %v728_v61 = vpop.f32.mrf.mxu2 }
 0x26f   : > { %v1011_v9 = vmul.f32 %v969_v58, %v728_v61 }
 0x276   : > { %v731_v0 = vpop.f32.mrf.mxu2 }
 0x277   : > { %v1012_v63 = vmul.f32 %v972_v62, %v731_v0 }
 0x27e   : > { %v733_v2 = vpop.f32.mrf.mxu2 }
 0x27f   : > { %v1013_v49 = vmul.f32 %v975_v1, %v733_v2 }
 0x286   : > { %v736_v4 = vpop.f32.mrf.mxu2 }
 0x287   : > { %v1014_v54 = vmul.f32 %v978_v3, %v736_v4 }
 0x28e   : > { %v738_v6 = vpop.f32.mrf.mxu2 }
 0x28f   : > { %v1015_v7 = vmul.f32 %v981_v5, %v738_v6 }
 0x291   : > { %1043 = vmatpush.msra.mxu1 %v1015_v7 }
 0x293   : > { %1044 = vmatpush.msra.mxu1 %v1014_v54 }
 0x295   : > { %1045 = vmatpush.msra.mxu1 %v1013_v49 }
 0x297   : > { %1046 = vmatpush.msra.mxu1 %v1012_v63 }
 0x299   : > { %1047 = vmatpush.msra.mxu1 %v1011_v9 }
 0x29b   : > { %1048 = vmatpush.msra.mxu1 %v1010_v10 }
 0x29d   : > { %1049 = vmatpush.msra.mxu1 %v1009_v11 }
 0x29f   : > { %1050 = vmatpush.msra.mxu1 %v1008_v55 }
 0x2a1   : > { %1051 = vmatpush.msra.mxu1 %v1007_v48 }
 0x2a3   : > { %1052 = vmatpush.msra.mxu1 %v1006_v40 }
 0x2a5   : > { %1053 = vmatpush.msra.mxu1 %v1815_v35 }
 0x2a7   : > { %1054 = vmatpush.msra.mxu1 %v1813_v30 }
 0x2a9   : > { %1055 = vmatpush.msra.mxu1 %v1811_v25 }
 0x2ab   : > { %1056 = vmatpush.msra.mxu1 %v1809_v20 }
 0x2ad   : > { %1057 = vmatpush.msra.mxu1 %v1807_v17 }
 0x2af   : > { %1058 = vmatpush.msra.mxu1 %v1805_v12 }
 0x2b0   : > { %1059 = vmatmul.f32.vlgmr.msra.gmra.mxu1 %v1017_v13 }
 0x2b8   : > { %1062 = vmatmul.f32.gmra.mxu1 %v1019_v14 }
 0x2df   : > { %v1037_v15 = vpop.f32.mrf.mxu0 }
 0x2e7   : > { %v1040_v12 = vpop.f32.mrf.mxu0 }
 0x32d   : > { %v1060_v16 = vpop.f32.mrf.mxu1 }
 0x32e   : > { %v1061_v18 = vadd.f32 %v1060_v16, %v1037_v15 }
 0x330   : > { %1066 = vst [vmem:[%s347_s15] sm:$0xff] %v1061_v18 }
 0x335   : > { %v1063_v17 = vpop.f32.mrf.mxu1 }
 0x336   : > { %v1064_v19 = vadd.f32 %v1063_v17, %v1040_v12 }
 0x338   : > { %1067 = vst [vmem:[%s347_s15 + $0x8] sm:$0xff] %v1064_v19 }
 0x339   : > { %1413 = shalt.err (!%p1410_p5)
}
 0x33a   : > { %s1451_s7 = smov 128   ;;  %s1452_s10 = smov 256  }
 0x33b   : > { %s1453_s11 = smov 8  }
 0x33c   : > { %1340 = dma.vmem_to_hbm [thread:$0]  (%p1531_p6), %s1081_s16, 256, %s1083_s17, %s1069_s18, %s1451_s7, %s1452_s10, %s1453_s11  }
 0x33d PF: > { %s1097_s12 = sand.u32 1, %s1436_s21   ;;  %p1343_p7 = pnand %p1171_p9, %p1535_p8 }
 0x33e   : > { %s1098_s13 = scalar_lea.sflag [#allocation5], %s1097_s12 }
 0x33f   : > { %p1344_p10 = pneg %p1343_p7 }
 0x341   : > { %1431 = dma.done.wait (%p1344_p10), %s1098_s13, 256  }
 0x342   : > { %1433 = vsyncadd (%p1344_p10), %s1098_s13, 4294967040  ;;  %p16_p11 = scmp.ge.s32.totalorder %s1512_s27, 4   ;;  %s1885_s21 = smov %s1440_s22 }
 0x343   : > { %s1886_s22 = smov %s1444_s23  ;;  %s1887_s23 = smov %s1525_s30 }
 0x344   : > { %s1888_s24 = smov %s1512_s27  ;;  %18 = sbr.rel (!%p16_p11) target bundleno = 3 (0x3), region = 168 }
 0x349   :  { %1104 = vsyncpa [#allocation5], 1 }
 0x34a   :  { %1106 = vsyncpa [#allocation5 + $0x1], 1 }

</bundles_post_ra>
